<compile_context>
chip_gen: v7x
topology: tpu7x:2x2x1
jax: 0.10.0
libtpu: 0.0.40
codegen_flags: <defaults>
</compile_context>

<pallas_src>
import jax
import jax.numpy as jnp
from jax import lax
from jax.experimental import pallas as pl
from jax.experimental.pallas import tpu as pltpu

THRESHOLD = 3.0
EPSILON = 1e-8

# Contract last dim of both operands: (tm, tk) x (tn, tk) -> (tm, tn).
_DIMS = (((1,), (1,)), ((), ()))


def _round_up(x, m):
    return ((x + m - 1) // m) * m


def _pad2d(a, rows, cols):
    pr, pc = rows - a.shape[0], cols - a.shape[1]
    if pr or pc:
        a = jnp.pad(a, ((0, pr), (0, pc)))
    return a


def _tile_sizes(B, OUT, IN, tm, tn, tk):
    tm = min(tm, _round_up(B, 8))
    tn = min(tn, _round_up(OUT, 128))
    tk = min(tk, _round_up(IN, 128))
    return tm, tn, tk


def _compiler_params():
    # Conservative VMEM budget: safe on v7x (64 MiB physical / 32 MiB scoped)
    # and leaves plenty of headroom on v5e/v6e.
    return pltpu.CompilerParams(
        dimension_semantics=("parallel", "parallel", "arbitrary"),
        vmem_limit_bytes=32 * 1024 * 1024)


# ---------------------------------------------------------------------------
# Kernels
# ---------------------------------------------------------------------------
def _linear_kernel(x_ref, w_ref, b_ref, o_ref, acc_ref):
    """Eval path: y = x @ w^T + b on pre-masked bf16 weights."""
    k = pl.program_id(2)

    @pl.when(k == 0)
    def _():
        # Fold the bias into the accumulator init (broadcast store).
        acc_ref[...] = jnp.broadcast_to(b_ref[...], acc_ref.shape)

    acc_ref[...] += lax.dot_general(
        x_ref[...], w_ref[...], _DIMS, preferred_element_type=jnp.float32)

    @pl.when(k == pl.num_programs(2) - 1)
    def _():
        o_ref[...] = acc_ref[...].astype(o_ref.dtype)


def _train_kernel(x_ref, x2_ref, wmu_ref, wvar_ref, b_ref, rv_ref, o_ref,
                  acc_mu_ref, acc_var_ref):
    """Train path (local reparameterization): both matmuls fused in one K loop."""
    k = pl.program_id(2)

    @pl.when(k == 0)
    def _():
        acc_mu_ref[...] = jnp.broadcast_to(b_ref[...], acc_mu_ref.shape)
        acc_var_ref[...] = jnp.zeros_like(acc_var_ref)

    acc_mu_ref[...] += lax.dot_general(
        x_ref[...], wmu_ref[...], _DIMS, preferred_element_type=jnp.float32)
    acc_var_ref[...] += lax.dot_general(
        x2_ref[...], wvar_ref[...], _DIMS, preferred_element_type=jnp.float32)

    @pl.when(k == pl.num_programs(2) - 1)
    def _():
        y_sigma = jnp.sqrt(jnp.maximum(acc_var_ref[...], EPSILON))
        o_ref[...] = (acc_mu_ref[...] + rv_ref[...] * y_sigma).astype(o_ref.dtype)


# ---------------------------------------------------------------------------
# Wrappers
# ---------------------------------------------------------------------------
def _tiled_linear(x, w, bias, *, tm, tn, tk, matmul_dtype):
    B, IN = x.shape
    OUT = w.shape[0]
    tm, tn, tk = _tile_sizes(B, OUT, IN, tm, tn, tk)
    Bp, OUTp, INp = _round_up(B, tm), _round_up(OUT, tn), _round_up(IN, tk)

    x_p = _pad2d(x.astype(matmul_dtype), Bp, INp)
    w_p = _pad2d(w.astype(matmul_dtype), OUTp, INp)
    b_p = _pad2d(bias.reshape(1, -1).astype(jnp.float32), 1, OUTp)

    grid = (Bp // tm, OUTp // tn, INp // tk)
    out = pl.pallas_call(
        _linear_kernel,
        out_shape=jax.ShapeDtypeStruct((Bp, OUTp), jnp.float32),
        grid_spec=pltpu.PrefetchScalarGridSpec(
            num_scalar_prefetch=0,
            grid=grid,
            in_specs=[
                pl.BlockSpec((tm, tk), lambda i, j, k: (i, k)),   # x
                pl.BlockSpec((tn, tk), lambda i, j, k: (j, k)),   # w (OUT, IN)
                pl.BlockSpec((1, tn), lambda i, j, k: (0, j)),    # bias
            ],
            out_specs=pl.BlockSpec((tm, tn), lambda i, j, k: (i, j)),
            scratch_shapes=[pltpu.VMEM((tm, tn), jnp.float32)],
        ),
        compiler_params=_compiler_params(),
    )(x_p, w_p, b_p)
    return out[:B, :OUT]


def vdrop_linear_eval(x, w_mu, w_logsigma2, bias=None, *,
                      tm=128, tn=256, tk=256, matmul_dtype=jnp.bfloat16):
    OUT = w_mu.shape[0]
    if bias is None:
        bias = jnp.zeros((OUT,), jnp.float32)
    # Batch-invariant masking hoisted out of the kernel (compare stays f32).
    w_logalpha = w_logsigma2 - jnp.log(w_mu * w_mu + EPSILON)
    w = jnp.where(w_logalpha < THRESHOLD, w_mu, 0.0)
    return _tiled_linear(x, w, bias, tm=tm, tn=tn, tk=tk,
                         matmul_dtype=matmul_dtype)


def vdrop_linear_train(x, w_mu, w_logsigma2, bias, rv, *,
                       tm=128, tn=256, tk=256, matmul_dtype=jnp.bfloat16):
    B, IN = x.shape
    OUT = w_mu.shape[0]
    if bias is None:
        bias = jnp.zeros((OUT,), jnp.float32)
    tm, tn, tk = _tile_sizes(B, OUT, IN, tm, tn, tk)
    Bp, OUTp, INp = _round_up(B, tm), _round_up(OUT, tn), _round_up(IN, tk)

    # Batch-invariant exp() and the x^2 squaring are hoisted out of the kernel
    # (single elementwise passes; square done in f32 before casting down).
    w_var = jnp.exp(w_logsigma2)
    x_f32 = x.astype(jnp.float32)
    x2 = x_f32 * x_f32

    x_p = _pad2d(x_f32.astype(matmul_dtype), Bp, INp)
    x2_p = _pad2d(x2.astype(matmul_dtype), Bp, INp)
    wmu_p = _pad2d(w_mu.astype(matmul_dtype), OUTp, INp)
    wvar_p = _pad2d(w_var.astype(matmul_dtype), OUTp, INp)
    b_p = _pad2d(bias.reshape(1, -1).astype(jnp.float32), 1, OUTp)
    rv_p = _pad2d(rv.astype(jnp.float32), Bp, OUTp)

    grid = (Bp // tm, OUTp // tn, INp // tk)
    out = pl.pallas_call(
        _train_kernel,
        out_shape=jax.ShapeDtypeStruct((Bp, OUTp), jnp.float32),
        grid_spec=pltpu.PrefetchScalarGridSpec(
            num_scalar_prefetch=0,
            grid=grid,
            in_specs=[
                pl.BlockSpec((tm, tk), lambda i, j, k: (i, k)),   # x
                pl.BlockSpec((tm, tk), lambda i, j, k: (i, k)),   # x^2
                pl.BlockSpec((tn, tk), lambda i, j, k: (j, k)),   # w_mu
                pl.BlockSpec((tn, tk), lambda i, j, k: (j, k)),   # exp(w_logsigma2)
                pl.BlockSpec((1, tn), lambda i, j, k: (0, j)),    # bias
                pl.BlockSpec((tm, tn), lambda i, j, k: (i, j)),   # rv
            ],
            out_specs=pl.BlockSpec((tm, tn), lambda i, j, k: (i, j)),
            scratch_shapes=[pltpu.VMEM((tm, tn), jnp.float32),
                            pltpu.VMEM((tm, tn), jnp.float32)],
        ),
        compiler_params=_compiler_params(),
    )(x_p, x2_p, wmu_p, wvar_p, b_p, rv_p)
    return out[:B, :OUT]


# ---------------------------------------------------------------------------
# Parameter init (mirrors VDropLinear.__init__)
# ---------------------------------------------------------------------------
def init_vdrop_linear(key, in_features, out_features, bias=True):
    # kaiming_normal_(mode='fan_out'): std = sqrt(2 / fan_out)
    std = (2.0 / out_features) ** 0.5
    w_mu = std * jax.random.normal(key, (out_features, in_features), jnp.float32)
    w_logsigma2 = jnp.full((out_features, in_features), -10.0, jnp.float32)
    b = jnp.zeros((out_features,), jnp.float32) if bias else None
    return w_mu, w_logsigma2, b


# ---------------------------------------------------------------------------
# Pure-JAX references (for correctness check)
# ---------------------------------------------------------------------------
def _ref_eval(x, w_mu, w_logsigma2, bias):
    w_logalpha = w_logsigma2 - jnp.log(w_mu ** 2 + EPSILON)
    mask = (w_logalpha < THRESHOLD).astype(jnp.float32)
    return x @ (w_mu * mask).T + bias


def _ref_train(x, w_mu, w_logsigma2, bias, rv):
    y_mu = x @ w_mu.T + bias
    y_sigma = jnp.sqrt(jnp.maximum(x ** 2 @ jnp.exp(w_logsigma2).T, EPSILON))
    return y_mu + rv * y_sigma


# ---------------------------------------------------------------------------
if __name__ == "__main__":
    key = jax.random.PRNGKey(0)

    # (aligned multi-tile grid case, ragged/padded tiny case)
    for (batch, in_features, out_features) in [(16, 512, 384), (8, 32, 32)]:
        k_w, k_x, k_rv, key = jax.random.split(key, 4)
        w_mu, w_logsigma2, bias = init_vdrop_linear(k_w, in_features, out_features)
        x = jax.random.normal(k_x, (batch, in_features), jnp.float32)
        # TODO(synk): torch draws rv in-place on device; here it is generated in
        # plain JAX and passed in so the kernel stays deterministic/testable.
        rv = jax.random.normal(k_rv, (batch, out_features), jnp.float32)

        y_eval = jax.block_until_ready(
            vdrop_linear_eval(x, w_mu, w_logsigma2, bias))
        y_train = jax.block_until_ready(
            vdrop_linear_train(x, w_mu, w_logsigma2, bias, rv))

        # bf16 MXU operands with f32 accumulation -> relaxed tolerance vs f32 ref.
        assert jnp.allclose(y_eval, _ref_eval(x, w_mu, w_logsigma2, bias),
                            atol=5e-2, rtol=5e-2), "eval mismatch"
        assert jnp.allclose(y_train, _ref_train(x, w_mu, w_logsigma2, bias, rv),
                            atol=5e-2, rtol=5e-2), "train mismatch"

    print("KERNEL_OK")
</pallas_src>

<mosaic_0001>
module attributes {stable_mosaic.version = 11 : i64} {
  func.func @_linear_kernel(%arg0: i32, %arg1: i32, %arg2: i32, %arg3: memref<16x256xbf16, #tpu.memory_space<vmem>>, %arg4: memref<256x256xbf16, #tpu.memory_space<vmem>>, %arg5: memref<1x256xf32, #tpu.memory_space<vmem>>, %arg6: memref<16x256xf32, #tpu.memory_space<vmem>>, %arg7: memref<16x256xf32, #tpu.memory_space<vmem>>) attributes {dimension_semantics = [#tpu.dimension_semantics<parallel>, #tpu.dimension_semantics<parallel>, #tpu.dimension_semantics<arbitrary>], iteration_bounds = array<i64: 1, 2, 2>, scalar_prefetch = 0 : i64, scratch_operands = 1 : i64, tpu.core_type = #tpu.core_type<tc>, window_params = [{transform_indices = @transform_0, window_bounds = array<i64: 16, 256>}, {transform_indices = @transform_1, window_bounds = array<i64: 256, 256>}, {transform_indices = @transform_2, window_bounds = array<i64: 1, 256>}, {transform_indices = @transform_3, window_bounds = array<i64: 16, 256>}]} {
    %c0_i32 = arith.constant 0 : i32
    %0 = arith.cmpi eq, %arg2, %c0_i32 : i32
    %1 = arith.extui %0 : i1 to i32
    %c0_i32_0 = arith.constant 0 : i32
    %2 = arith.cmpi ne, %1, %c0_i32_0 : i32
    scf.if %2 {
      %c0_9 = arith.constant 0 : index
      %c0_10 = arith.constant 0 : index
      %12 = vector.load %arg5[%c0_9, %c0_10] : memref<1x256xf32, #tpu.memory_space<vmem>>, vector<1x256xf32>
      %13 = vector.shape_cast %12 : vector<1x256xf32> to vector<1x256xf32>
      %14 = vector.broadcast %13 : vector<1x256xf32> to vector<16x256xf32>
      %c0_11 = arith.constant 0 : index
      %c0_12 = arith.constant 0 : index
      %15 = vector.load %arg7[%c0_11, %c0_12] : memref<16x256xf32, #tpu.memory_space<vmem>>, vector<16x256xf32>
      tpu.vector_store %arg7[%c0_11, %c0_12], %14 {strides = array<i32>} : memref<16x256xf32, #tpu.memory_space<vmem>>, vector<16x256xf32>,
    } else {
    }
    %c0 = arith.constant 0 : index
    %c0_1 = arith.constant 0 : index
    %3 = vector.load %arg7[%c0, %c0_1] : memref<16x256xf32, #tpu.memory_space<vmem>>, vector<16x256xf32>
    %c0_2 = arith.constant 0 : index
    %c0_3 = arith.constant 0 : index
    %4 = vector.load %arg3[%c0_2, %c0_3] : memref<16x256xbf16, #tpu.memory_space<vmem>>, vector<16x256xbf16>
    %c0_4 = arith.constant 0 : index
    %c0_5 = arith.constant 0 : index
    %5 = vector.load %arg4[%c0_4, %c0_5] : memref<256x256xbf16, #tpu.memory_space<vmem>>, vector<256x256xbf16>
    %cst = arith.constant dense<0.000000e+00> : vector<16x256xf32>
    %6 = tpu.matmul %4, %5, %cst {dimension_numbers = #tpu.dot_dimension_numbers<[1], [1], [0], [0], [0, 0, 1, 0], [], []>} : vector<16x256xbf16>, vector<256x256xbf16>, vector<16x256xf32> -> vector<16x256xf32>
    %7 = arith.addf %3, %6 : vector<16x256xf32>
    %c0_6 = arith.constant 0 : index
    %c0_7 = arith.constant 0 : index
    %8 = vector.load %arg7[%c0_6, %c0_7] : memref<16x256xf32, #tpu.memory_space<vmem>>, vector<16x256xf32>
    tpu.vector_store %arg7[%c0_6, %c0_7], %7 {strides = array<i32>} : memref<16x256xf32, #tpu.memory_space<vmem>>, vector<16x256xf32>,
    %c1_i32 = arith.constant 1 : i32
    %9 = arith.cmpi eq, %arg2, %c1_i32 : i32
    %10 = arith.extui %9 : i1 to i32
    %c0_i32_8 = arith.constant 0 : i32
    %11 = arith.cmpi ne, %10, %c0_i32_8 : i32
    scf.if %11 {
      %c0_9 = arith.constant 0 : index
      %c0_10 = arith.constant 0 : index
      %12 = vector.load %arg7[%c0_9, %c0_10] : memref<16x256xf32, #tpu.memory_space<vmem>>, vector<16x256xf32>
      %c0_11 = arith.constant 0 : index
      %c0_12 = arith.constant 0 : index
      %13 = vector.load %arg6[%c0_11, %c0_12] : memref<16x256xf32, #tpu.memory_space<vmem>>, vector<16x256xf32>
      tpu.vector_store %arg6[%c0_11, %c0_12], %12 {strides = array<i32>} : memref<16x256xf32, #tpu.memory_space<vmem>>, vector<16x256xf32>,
    } else {
    }
    return
  }
  func.func @transform_0(%arg0: i32, %arg1: i32, %arg2: i32) -> (i32, i32) {
    %c0_i32 = arith.constant 0 : i32
    return %arg0, %arg2 : i32, i32
  }
  func.func @transform_1(%arg0: i32, %arg1: i32, %arg2: i32) -> (i32, i32) {
    %c0_i32 = arith.constant 0 : i32
    return %arg1, %arg2 : i32, i32
  }
  func.func @transform_2(%arg0: i32, %arg1: i32, %arg2: i32) -> (i32, i32) {
    %c0_i32 = arith.constant 0 : i32
    %c0_i32_0 = arith.constant 0 : i32
    return %c0_i32, %arg1 : i32, i32
  }
  func.func @transform_3(%arg0: i32, %arg1: i32, %arg2: i32) -> (i32, i32) {
    %c0_i32 = arith.constant 0 : i32
    return %arg0, %arg1 : i32, i32
  }
}

</mosaic_0001>

<bundles_post_ra>
// kernel: tpu_custom_call.1
= control target key start
LH: loop header
LB: loop body
LE: loop exit
PB: predicated region body
PF: predicated region fallthrough
CT: control target
= control target key end

     0   :  { %s1629_s0 = inlined_call_operand.hbm [shape: bf16[16,512], index: 0, kind: input, shape index: {}]   ;;  %s1630_s1 = inlined_call_operand.hbm [shape: bf16[512,512], index: 1, kind: input, shape index: {}]   ;;  %s1631_s2 = inlined_call_operand.vmem [shape: f32[1,512], index: 2, kind: input, shape index: {}]   ;;  %s1632_s3 = inlined_call_operand.hbm [shape: f32[16,512], index: 3, kind: output, shape index: {}]  }
   0x1   :  { %1646 = sst [smem:[#allocation18_spill]] %s1629_s0 }
   0x2   :  { %1647 = sst [smem:[#allocation19_spill]] %s1632_s3 }
   0x3   :  { %8 = vsyncpa [#allocation4], 0 }
   0x4   :  { %10 = vsyncpa [#allocation4 + $0x1], 0 }
   0x5   :  { %11 = vsyncpa [#allocation7], 0 }
   0x6   :  { %13 = vsyncpa [#allocation7 + $0x1], 0 }
   0x7   :  { %14 = vsyncpa [#allocation5], 0 }
   0x8   :  { %16 = vsyncpa [#allocation5 + $0x1], 0  ;;  %s1211_s12 = smov 0   ;;  %s1213_s13 = smov 0  }
   0x9   :  { %s1215_s14 = smov 0   ;;  %s1217_s15 = smov 0  }
   0xa   :  { %s1219_s16 = smov 0   ;;  %s1221_s17 = smov 0  }
   0xb   :  { %s1223_s18 = smov 0   ;;  %s1225_s19 = smov 0  }
   0xc   :  { %s1227_s20 = smov 0   ;;  %s1229_s21 = smov 0  }
   0xd   :  { %s1231_s22 = smov 0   ;;  %s1233_s23 = smov 0  }
   0xe   :  { %s1235_s24 = smov 0   ;;  %s1237_s25 = smov 0  }
   0xf LB: > { %1648 = sst [smem:[#allocation12_spill]] %s1160_s20  ;;  %s721_s26 = sadd.s32 4294967295, %s1180_s25   ;;  %s1180_s25 = sphi %s1237_s25, %s22_s25   ;;  %s1176_s24 = sphi %s1235_s24, %s1698_s24   ;;  %s1172_s23 = sphi %s1233_s23, %s1697_s23   ;;  %s1168_s22 = sphi %s1231_s22, %s1696_s22   ;;  %s1164_s21 = sphi %s1229_s21, %s1695_s21   ;;  %s1160_s20 = sphi %s1227_s20, %s1684_s20   ;;  %s1156_s19 = sphi %s1225_s19, %s1694_s19   ;;  %s1152_s18 = sphi %s1223_s18, %s1693_s18   ;;  %s1148_s17 = sphi %s1221_s17, %s1692_s17   ;;  %s1144_s16 = sphi %s1219_s16, %s1691_s16   ;;  %s1140_s15 = sphi %s1217_s15, %s1690_s15   ;;  %s1136_s14 = sphi %s1215_s14, %s1689_s14   ;;  %s1132_s13 = sphi %s1213_s13, %s1688_s13   ;;  %s1128_s12 = sphi %s1211_s12, %s1687_s12  }
  0x10   : > { %1649 = sst [smem:[#allocation13_spill]] %s1164_s21  ;;  %s34_s27 = sadd.s32 1, %s1172_s23 }
  0x11   : > { %p1281_p0 = scmp.ge.s32.totalorder %s34_s27, 2  ;;  %s50_s29 = sadd.s32 1, %s1160_s20 }
  0x12   : > { %p57_p1 = scmp.ne.s32.totalorder %s1160_s20, %s1156_s19  ;;  %p1636_p2 = scmp.eq.s32.totalorder %s1180_s25, 0 }
  0x13   : > { %s1700_s27 = smov (%p1281_p0, %s34_s27), 0  ;;  %p63_p4 = scmp.ne.s32.totalorder %s1156_s19, %s1152_s18 }
  0x14   : > { %1651 = sst [smem:[#allocation14_spill]] %s1700_s27  ;;  %p1295_p3 = por %p1636_p2, %p57_p1 }
  0x15   : > { %s1302_s4 = ssub.s32 %s1172_s23, %s1700_s27  ;;  %p1304_p5 = scmp.eq.s32.totalorder %s721_s26, 0 }
  0x16   : > { %p48_p6 = scmp.eq.s32.totalorder %s1302_s4, 0  ;;  %p1309_p7 = scmp.eq.s32.totalorder %s721_s26, 3 }
  0x17   : > { %s1653_s5 = scalar_select %p1304_p5, 1, 0 }
  0x18   : > { %s1654_s6 = scalar_select %p1309_p7, 1, 0 }
  0x19   : > { %p1315_p8 = por %p1304_p5, %p63_p4  ;;  %p1635_p9 = scmp.lt.s32.totalorder %s1180_s25, 4 }
  0x1a   : > { %s1320_s8 = scalar_select %p48_p6, %s1160_s20, %s50_s29  }
  0x1b   : > { %s1655_s7 = scalar_select %p1315_p8, 1, 0 }
  0x1c   : > { %1656 = sst [smem:[#allocation15_spill]] %s1320_s8  ;;  %s169_s9 = sand.u32 1, %s1160_s20  }
  0x1d   : > { %s725_s10 = sshll.u32 %s169_s9, 4  ;;  %s779_s11 = sshll.u32 %s1172_s23, 7 }
  0x1e   : > { %s1657_s0 = sld [smem:[#allocation18_spill]]  ;;  %s173_s26 = scalar_lea.vmem [#allocation3], %s725_s10 }
  0x1f   : > { %s183_s21 = sshll.u32 %s173_s26, 4  ;;  %p1336_p10 = pnand %p1635_p9, %p1295_p3  ;;  %s1330_s21 = int_to_ptr.vmem [resolvable:$true] %s183_s21 }
  0x20   : > { %s1340_s8 = scalar_lea.sflag [#allocation4], %s169_s9 }
  0x21   : > { %p972_p12 = pneg %p1336_p10 }
  0x24   : > { %s1328_s3 = scalar_lea.hbm %s1657_s0, %s779_s11  ;;  %s975_s30 = scalar_lea.hbm %s1657_s0, 512 }
  0x25   : > { %s970_s27 = scalar_lea.hbm %s1328_s3, 256  ;;  %p976_p3 = scmp.lt.u32.totalorder %s1328_s3, %s1657_s0 }
  0x26   : > { %p971_p11 = scmp.ne.s32.totalorder %s1328_s3, %s970_s27  ;;  %p977_p4 = scmp.lt.u32.totalorder %s975_s30, %s970_s27 }
  0x27   : > { %p979_p9 = scmp.lt.u32.totalorder %s970_s27, %s1328_s3 }
  0x28   : > { %p973_p13 = pnand %p972_p12, %p971_p11  ;;  %p978_p6 = por %p977_p4, %p976_p3 }
  0x2a   : > { %p974_p1 = pneg %p973_p13  ;;  %p980_p2 = por %p979_p9, %p978_p6 }
  0x2c   : > { %p981_p8 = pnand %p980_p2, %p974_p1 }
  0x2e   : > { %984 = shalt.err (!%p981_p8)
}
  0x2f   : > { %s985_s9 = scalar_lea.vmem %s1330_s21, 256  ;;  %s1182_s10 = smov [#allocation3]  }
  0x30   : > { %p986_p11 = scmp.ne.s32.totalorder %s1330_s21, %s985_s9  ;;  %s990_s11 = sshll.u32 %s1182_s10, 4  ;;  %s991_s11 = int_to_ptr.vmem [resolvable:$false] %s990_s11 }
  0x31   : > { %s992_s18 = scalar_lea.vmem %s991_s11, 512  ;;  %p993_p5 = scmp.lt.s32.totalorder %s1330_s21, %s991_s11 }
  0x32   : > { %p988_p13 = pnand %p986_p11, %p972_p12  ;;  %p994_p3 = scmp.lt.s32.totalorder %s992_s18, %s985_s9 }
  0x34   : > { %p989_p7 = pneg %p988_p13  ;;  %p995_p4 = por %p994_p3, %p993_p5 }
  0x36   : > { %p996_p9 = pnand %p995_p4, %p989_p7 }
  0x38   : > { %999 = shalt.err (!%p996_p9)
}
  0x39   : > { %s1639_s27 = smov 256   ;;  %s1640_s30 = smov 128  }
  0x3a   : > { %s1641_s26 = smov 8   ;;  %p733_p2 = scmp.ge.s32.totalorder %s1180_s25, 1 }
  0x3b   : > { %791 = dma.hbm_to_vmem [thread:$0]  (!%p1336_p10), %s1328_s3, 256, %s1330_s21, %s1340_s8, %s1639_s27, %s1640_s30, %s1641_s26  }
  0x3c   : > { %p223_p5 = scmp.lt.s32.totalorder %s1180_s25, 5  ;;  %s722_s10 = sadd.s32 4294967294, %s1180_s25  }
  0x3d   : > { %s37_s11 = sadd.s32 1, %s1176_s24  ;;  %s78_s18 = sadd.s32 1, %s1148_s17 }
  0x3e   : > { %p1373_p7 = pnand %p733_p2, %p223_p5  ;;  %s1702_s11 = smov (!%p1281_p0, %s37_s11), %s1176_s24 }
  0x3f   : > { %p85_p8 = scmp.ne.s32.totalorder %s1148_s17, %s1144_s16  ;;  %p91_p10 = scmp.ne.s32.totalorder %s1144_s16, %s1140_s15 }
  0x40   : > { %p39_p12 = scmp.ge.s32.totalorder %s1702_s11, 2  ;;  %s132_s3 = sadd.s32 1, %s1136_s14 }
  0x41   : > { %p1660_p1 = scmp.eq.s32.totalorder %s1180_s25, 0  ;;  %p1662_p11 = scmp.ne.s32.totalorder %s1653_s5, 0 }
  0x42   : > { %s1704_s11 = smov (%p39_p12, %s1702_s11), 0  ;;  %p142_p0 = scmp.ne.s32.totalorder %s1136_s14, %s1132_s13 }
  0x43   : > { %p1390_p6 = por %p85_p8, %p1660_p1  ;;  %p1396_p13 = por %p91_p10, %p1662_p11 }
  0x44   : > { %1664 = sst [smem:[#allocation16_spill]] %s1704_s11  ;;  %p148_p3 = scmp.ne.s32.totalorder %s1132_s13, %s1128_s12 }
  0x45   : > { %s1663_s8 = scalar_select %p1396_p13, 1, 0 }
  0x46   : > { %s73_s15 = ssub.s32 %s1176_s24, %s1704_s11  ;;  %p149_p4 = scmp.eq.s32.totalorder %s722_s10, 3 }
  0x47   : > { %s75_s28 = sor.u32 %s73_s15, %s1302_s4  ;;  %p130_p9 = scmp.eq.s32.totalorder %s73_s15, 0 }
  0x48   : > { %p76_p2 = scmp.eq.s32.totalorder %s75_s28, 0  ;;  %p1665_p5 = scmp.ne.s32.totalorder %s1654_s6, 0 }
  0x49   : > { %s1416_s29 = scalar_select %p130_p9, %s1136_s14, %s132_s3  }
  0x4a   : > { %p1411_p8 = por %p1665_p5, %p142_p0  ;;  %p1421_p10 = por %p149_p4, %p148_p3 }
  0x4b   : > { %s1419_s27 = scalar_select %p76_p2, %s1148_s17, %s78_s18  }
  0x4c   : > { %s1666_s5 = scalar_select %p1411_p8, 1, 0 }
  0x4d   : > { %1667 = sst [smem:[#allocation17_spill]] %s1419_s27  ;;  %s193_s26 = sand.u32 1, %s1148_s17  }
  0x4e   : > { %s1668_s30 = scalar_select %p1421_p10, 1, 0 }
  0x4f   : > { %s728_s10 = sshll.u32 %s193_s26, 8  ;;  %s730_s4 = sshll.u32 %s1172_s23, 1 }
  0x50   : > { %s780_s0 = sshll.u32 %s1176_s24, 7  ;;  %s197_s11 = scalar_lea.vmem [#allocation6], %s728_s10 }
  0x51   : > { %s207_s15 = sshll.u32 %s197_s11, 4  ;;  %s204_s28 = sadd.s32 %s780_s0, %s730_s4  ;;  %s1428_s15 = int_to_ptr.vmem [resolvable:$true] %s207_s15 }
  0x52   : > { %s732_s6 = sshll.u32 %s204_s28, 6  ;;  %p1669_p12 = scmp.lt.s32.totalorder %s1180_s25, 4 }
  0x53   : > { %s1441_s27 = scalar_lea.hbm %s1630_s1, %s732_s6  ;;  %s1443_s0 = scalar_lea.sflag [#allocation7], %s193_s26 }
  0x54   : > { %p1434_p1 = pnand %p1669_p12, %p1390_p6  ;;  %s1000_s11 = scalar_lea.hbm %s1441_s27, 4096 }
  0x55   : > { %p1001_p11 = scmp.ne.s32.totalorder %s1441_s27, %s1000_s11  ;;  %s1005_s10 = scalar_lea.hbm %s1630_s1, 16384 }
  0x56   : > { %p1002_p6 = pneg %p1434_p1  ;;  %p1006_p4 = scmp.lt.u32.totalorder %s1441_s27, %s1630_s1 }
  0x57   : > { %p1007_p9 = scmp.lt.u32.totalorder %s1005_s10, %s1000_s11  ;;  %p1009_p5 = scmp.lt.u32.totalorder %s1000_s11, %s1441_s27 }
  0x58   : > { %p1003_p0 = pnand %p1002_p6, %p1001_p11 }
  0x59   : > { %p1008_p2 = por %p1007_p9, %p1006_p4 }
  0x5a   : > { %p1004_p3 = pneg %p1003_p0 }
  0x5b   : > { %p1010_p12 = por %p1009_p5, %p1008_p2 }
  0x5d   : > { %p1011_p10 = pnand %p1010_p12, %p1004_p3 }
  0x5f   : > { %1014 = shalt.err (!%p1011_p10)
}
  0x60   : > { %s1015_s26 = scalar_lea.vmem %s1428_s15, 4096  ;;  %s1186_s6 = smov [#allocation6]  }
  0x61   : > { %p1016_p11 = scmp.ne.s32.totalorder %s1428_s15, %s1015_s26  ;;  %s1020_s18 = sshll.u32 %s1186_s6, 4  ;;  %s1021_s18 = int_to_ptr.vmem [resolvable:$false] %s1020_s18 }
  0x62   : > { %s1022_s21 = scalar_lea.vmem %s1021_s18, 8192  ;;  %p1023_p13 = scmp.lt.s32.totalorder %s1428_s15, %s1021_s18 }
  0x63   : > { %p1018_p0 = pnand %p1016_p11, %p1002_p6  ;;  %p1024_p4 = scmp.lt.s32.totalorder %s1022_s21, %s1015_s26 }
  0x65   : > { %p1019_p8 = pneg %p1018_p0  ;;  %p1025_p9 = por %p1024_p4, %p1023_p13 }
  0x67   : > { %p1026_p2 = pnand %p1025_p9, %p1019_p8 }
  0x69   : > { %1029 = shalt.err (!%p1026_p2)
}
  0x6a   : > { %s1671_s11 = smov 8   ;;  %s1672_s20 = smov 128  }
  0x6b   : > { %s1673_s10 = smov 256   ;;  %227 = sbr.rel (%p1373_p7) target bundleno = 521 (0x209), region = 32 }
  0x6c   : > { %794 = dma.hbm_to_vmem [thread:$0]  (!%p1434_p1), %s1441_s27, 4096, %s1428_s15, %s1443_s0, %s1673_s10, %s1672_s20, %s1671_s11  }
  0x6d   : > { %s229_s4 = sand.u32 (!%p1373_p7), 1, %s1156_s19   ;;  %p1674_p13 = scmp.ne.s32.totalorder (!%p1373_p7), %s1655_s7, 0 }
  0x6e   : > { %s1477_s28 = sshll.u32 (!%p1373_p7), %s229_s4, 4  ;;  %s230_s26 = scalar_lea.sflag (!%p1373_p7), [#allocation4], %s229_s4 }
  0x6f   : > { %s233_s6 = scalar_lea.vmem (!%p1373_p7), [#allocation3], %s1477_s28 }
  0x72   : > { %1115 = dma.done.wait (%p1674_p13), %s230_s26, 256  }
  0x73   : > { %1117 = vsyncadd (%p1674_p13), %s230_s26, 4294967040  ;;  %s238_s3 = sand.u32 1, %s1144_s16   ;;  %p1675_p7 = scmp.ne.s32.totalorder %s1663_s8, 0 }
  0x74   : > { %s735_s27 = sshll.u32 %s238_s3, 8  ;;  %s239_s15 = scalar_lea.sflag [#allocation7], %s238_s3 }
  0x75   : > { %s1485_s9 = scalar_lea.vmem [#allocation6], %s735_s27 }
  0x76   : > { %1119 = dma.done.wait (%p1675_p7), %s239_s15, 4096  }
  0x77   : > { %1121 = vsyncadd (%p1675_p7), %s239_s15, 4294963200  ;;  %s271_s0 = sand.u32 1, %s1132_s13   ;;  %s737_s18 = sshll.u32 %s1168_s22, 1 }
  0x78   : > { %s736_s7 = sshll.u32 %s271_s0, 5  ;;  %p279_p8 = scmp.lt.s32.totalorder %s737_s18, 3 }
  0x79   : > { %s1498_s10 = scalar_lea.vmem [#allocation8], %s736_s7  ;;  %s1676_s4 = sld [smem:[#allocation13_spill]] }
  0x7a   : > { %s1706_s18 = smov (!%p279_p8, %s737_s18), 3 }
  0x7b   : > { %s281_s20 = scalar_lea.vmem %s1631_s2, %s1706_s18 }
  0x7f   : > { %p738_p10 = scmp.ne.s32.totalorder %s1676_s4, 0 }
  0x80   : > { %v291_v0 = vlaneseq (!%p738_p10)  ;;  %v289_v2 = vld [vmem:[%s281_s20] sm:$0x3] (!%p738_p10) }
  0x81   : > { %288 = sbr.rel (%p738_p10) target bundleno = 138 (0x8a), region = 44 }
  0x82   : > { %v292_v1 = vshrl.u32 (!%p738_p10), %v291_v0, 7 }
  0x84   : > { %v293_v3 = vsub.s32 (!%p738_p10), 0, %v292_v1  ;;  %v297_v4 = vsub.s32 (!%p738_p10), 1, %v292_v1 }
  0x86   : > { %v294_v5 = vrot.slane (!%p738_p10), %v289_v2, %v293_v3  ;;  %v298_v6 = vrot.slane (!%p738_p10), %v289_v2, %v297_v4 }
  0x88   : > { %301 = vst [vmem:[#allocation2] sm:$0xff] %v294_v5  ;;  %303 = vst [vmem:[#allocation2 + $0x10] sm:$0xff] %v294_v5 }
  0x89   : > { %302 = vst [vmem:[#allocation2 + $0x8] sm:$0xff] %v298_v6  ;;  %304 = vst [vmem:[#allocation2 + $0x18] sm:$0xff] %v298_v6 }
  0x8a PF: > { %v919_v7 = vld [vmem:[%s1485_s9 + $0x4] ss:$8 sps:$4 sm:$0xff]   ;;  %v921_v8 = vld [vmem:[%s1485_s9] ss:$8 sps:$4 sm:$0xff]   ;;  %v922_v9 = vld [vmem:[%s1485_s9 + $0x14] ss:$8 sps:$4 sm:$0xff]  }
  0x8b   : > { %513 = vmatprep.subr.bf16.mxu0 %v919_v7  ;;  %v924_v10 = vld [vmem:[%s1485_s9 + $0x10] ss:$8 sps:$4 sm:$0xff]   ;;  %v925_v11 = vld [vmem:[%s1485_s9 + $0x24] ss:$8 sps:$4 sm:$0xff]   ;;  %v927_v12 = vld [vmem:[%s1485_s9 + $0x20] ss:$8 sps:$4 sm:$0xff]  }
  0x8c   : > { %514 = vmatpush1.bf16.xpose.msra.mxu0 %v921_v8  ;;  %v928_v13 = vld [vmem:[%s1485_s9 + $0x34] ss:$8 sps:$4 sm:$0xff]   ;;  %v930_v15 = vld [vmem:[%s1485_s9 + $0x30] ss:$8 sps:$4 sm:$0xff]   ;;  %v931_v16 = vld [vmem:[%s1485_s9 + $0x44] ss:$8 sps:$4 sm:$0xff]  }
  0x8d   : > { %515 = vmatprep.subr.bf16.mxu0 %v922_v9  ;;  %v969_v14 = vld [vmem:[%s233_s6 + $0x4] ss:$8 sps:$4 sm:$0xff]   ;;  %v933_v17 = vld [vmem:[%s1485_s9 + $0x40] ss:$8 sps:$4 sm:$0xff]   ;;  %v936_v19 = vld [vmem:[%s1485_s9 + $0x50] ss:$8 sps:$4 sm:$0xff]  }
  0x8e   : > { %545 = vmatprep.mubr.bf16.mxu0 %v969_v14  ;;  %v934_v18 = vld [vmem:[%s1485_s9 + $0x54] ss:$8 sps:$4 sm:$0xff]   ;;  %v937_v20 = vld [vmem:[%s1485_s9 + $0x64] ss:$8 sps:$4 sm:$0xff]   ;;  %v939_v21 = vld [vmem:[%s1485_s9 + $0x60] ss:$8 sps:$4 sm:$0xff]  }
  0x8f   : > { %v940_v22 = vld [vmem:[%s1485_s9 + $0x74] ss:$8 sps:$4 sm:$0xff]   ;;  %v942_v23 = vld [vmem:[%s1485_s9 + $0x70] ss:$8 sps:$4 sm:$0xff]   ;;  %v943_v24 = vld [vmem:[%s1485_s9 + $0x84] ss:$8 sps:$4 sm:$0xff]  }
  0x90   : > { %v945_v25 = vld [vmem:[%s1485_s9 + $0x80] ss:$8 sps:$4 sm:$0xff]   ;;  %v946_v26 = vld [vmem:[%s1485_s9 + $0x94] ss:$8 sps:$4 sm:$0xff]   ;;  %v948_v27 = vld [vmem:[%s1485_s9 + $0x90] ss:$8 sps:$4 sm:$0xff]  }
  0x91   : > { %v949_v28 = vld [vmem:[%s1485_s9 + $0xa4] ss:$8 sps:$4 sm:$0xff]   ;;  %v951_v29 = vld [vmem:[%s1485_s9 + $0xa0] ss:$8 sps:$4 sm:$0xff]   ;;  %v952_v30 = vld [vmem:[%s1485_s9 + $0xb4] ss:$8 sps:$4 sm:$0xff]  }
  0x92   : > { %v954_v31 = vld [vmem:[%s1485_s9 + $0xb0] ss:$8 sps:$4 sm:$0xff]   ;;  %v955_v32 = vld [vmem:[%s1485_s9 + $0xc4] ss:$8 sps:$4 sm:$0xff]   ;;  %v957_v33 = vld [vmem:[%s1485_s9 + $0xc0] ss:$8 sps:$4 sm:$0xff]  }
  0x93   : > { %v958_v34 = vld [vmem:[%s1485_s9 + $0xd4] ss:$8 sps:$4 sm:$0xff]   ;;  %v960_v35 = vld [vmem:[%s1485_s9 + $0xd0] ss:$8 sps:$4 sm:$0xff]   ;;  %v961_v36 = vld [vmem:[%s1485_s9 + $0xe4] ss:$8 sps:$4 sm:$0xff]  }
  0x94   : > { %516 = vmatpush1.bf16.xpose.msra.mxu0 %v924_v10  ;;  %v963_v37 = vld [vmem:[%s1485_s9 + $0xe0] ss:$8 sps:$4 sm:$0xff]   ;;  %v964_v38 = vld [vmem:[%s1485_s9 + $0xf4] ss:$8 sps:$4 sm:$0xff]   ;;  %v966_v39 = vld [vmem:[%s1485_s9 + $0xf0] ss:$8 sps:$4 sm:$0xff]  }
  0x95   : > { %517 = vmatprep.subr.bf16.mxu0 %v925_v11  ;;  %v967_v40 = vld [vmem:[%s233_s6] ss:$8 sps:$4 sm:$0xff]   ;;  %s1677_s8 = sld [smem:[#allocation13_spill]] }
  0x96   : > { %v305_v41 = vld [vmem:[#allocation2] sm:$0xff]  ;;  %v306_v42 = vld [vmem:[#allocation2 + $0x8] sm:$0xff]  ;;  %v307_v44 = vld [vmem:[#allocation2 + $0x10] sm:$0xff] }
  0x97   : > { %v308_v47 = vld [vmem:[#allocation2 + $0x18] sm:$0xff] }
  0x9b   : > { %p773_p1 = scmp.ne.s32.totalorder %s1677_s8, 1 }
  0x9c   : > { %518 = vmatpush1.bf16.xpose.msra.mxu0 %v927_v12 }
  0x9d   : > { %519 = vmatprep.subr.bf16.mxu0 %v928_v13 }
  0xa4   : > { %520 = vmatpush1.bf16.xpose.msra.mxu0 %v930_v15 }
  0xa5   : > { %521 = vmatprep.subr.bf16.mxu0 %v931_v16 }
  0xac   : > { %522 = vmatpush1.bf16.xpose.msra.mxu0 %v933_v17 }
  0xad   : > { %523 = vmatprep.subr.bf16.mxu0 %v934_v18 }
  0xb4   : > { %524 = vmatpush1.bf16.xpose.msra.mxu0 %v936_v19 }
  0xb5   : > { %525 = vmatprep.subr.bf16.mxu0 %v937_v20 }
  0xbc   : > { %526 = vmatpush1.bf16.xpose.msra.mxu0 %v939_v21 }
  0xbd   : > { %527 = vmatprep.subr.bf16.mxu0 %v940_v22 }
  0xc4   : > { %528 = vmatpush1.bf16.xpose.msra.mxu0 %v942_v23 }
  0xc5   : > { %529 = vmatprep.subr.bf16.mxu0 %v943_v24 }
  0xcc   : > { %530 = vmatpush1.bf16.xpose.msra.mxu0 %v945_v25 }
  0xcd   : > { %531 = vmatprep.subr.bf16.mxu0 %v946_v26 }
  0xd4   : > { %532 = vmatpush1.bf16.xpose.msra.mxu0 %v948_v27 }
  0xd5   : > { %533 = vmatprep.subr.bf16.mxu0 %v949_v28 }
  0xdc   : > { %534 = vmatpush1.bf16.xpose.msra.mxu0 %v951_v29 }
  0xdd   : > { %535 = vmatprep.subr.bf16.mxu0 %v952_v30 }
  0xe4   : > { %536 = vmatpush1.bf16.xpose.msra.mxu0 %v954_v31 }
  0xe5   : > { %537 = vmatprep.subr.bf16.mxu0 %v955_v32 }
  0xec   : > { %538 = vmatpush1.bf16.xpose.msra.mxu0 %v957_v33 }
  0xed   : > { %539 = vmatprep.subr.bf16.mxu0 %v958_v34 }
  0xf4   : > { %540 = vmatpush1.bf16.xpose.msra.mxu0 %v960_v35 }
  0xf5   : > { %541 = vmatprep.subr.bf16.mxu0 %v961_v36 }
  0xfc   : > { %542 = vmatpush1.bf16.xpose.msra.mxu0 %v963_v37 }
  0xfd   : > { %543 = vmatprep.subr.bf16.mxu0 %v964_v38 }
 0x104   : > { %544 = vmatpush1.bf16.xpose.msra.mxu0 %v966_v39 }
 0x10b   : > { %546 = vmatmul.mubr.bf16.vlgmr.msra.gmra.mrb[0].mxu0 %v967_v40 }
 0x1de   : > { %v547_v43 = vpop.f32.mrb[0].mxu0  ;;  %567 = sbr.rel (%p773_p1) target bundleno = 493 (0x1ed), region = 48 }
 0x1df   : > { %v556_v45 = vadd.f32 %v547_v43, %v305_v41  ;;  %v549_v46 = vpop.f32.mrb[1].mxu0 }
 0x1e0   : > { %v557_v48 = vadd.f32 %v549_v46, %v306_v42  ;;  %v551_v49 = vpop.f32.mrb[2].mxu0 }
 0x1e1   : > { %560 = vst [vmem:[#allocation2] sm:$0xff] %v556_v45  ;;  %v558_v50 = vadd.f32 %v551_v49, %v307_v44  ;;  %v553_v51 = vpop.f32.mrb[3].mxu0 }
 0x1e2   : > { %561 = vst [vmem:[#allocation2 + $0x8] sm:$0xff] %v557_v48  ;;  %v559_v52 = vadd.f32 %v553_v51, %v308_v47 }
 0x1e3   : > { %562 = vst [vmem:[#allocation2 + $0x10] sm:$0xff] %v558_v50 }
 0x1e4   : > { %563 = vst [vmem:[#allocation2 + $0x18] sm:$0xff] %v559_v52 }
 0x1e8   : > { %v568_v53 = vld [vmem:[#allocation2] sm:$0xff] }
 0x1e9   : > { %v569_v54 = vld [vmem:[#allocation2 + $0x8] sm:$0xff]  ;;  %572 = vst [vmem:[%s1498_s10] sm:$0xff] %v568_v53 }
 0x1ea   : > { %v570_v55 = vld [vmem:[#allocation2 + $0x10] sm:$0xff]  ;;  %573 = vst [vmem:[%s1498_s10 + $0x8] sm:$0xff] %v569_v54 }
 0x1eb   : > { %574 = vst [vmem:[%s1498_s10 + $0x10] sm:$0xff] %v570_v55  ;;  %v571_v56 = vld [vmem:[#allocation2 + $0x18] sm:$0xff] }
 0x1ec   : > { %575 = vst [vmem:[%s1498_s10 + $0x18] sm:$0xff] %v571_v56 }
 0x1ed PF: > { %s781_s28 = sshll.u32 %s1168_s22, 8  ;;  %s1678_s3 = sld [smem:[#allocation19_spill]] }
 0x1ee   : > { %s593_s15 = sshll.u32 %s1498_s10, 4  ;;  %s1553_s9 = scalar_lea.sflag [#allocation5], %s271_s0  ;;  %s1549_s15 = int_to_ptr.vmem [resolvable:$true] %s593_s15 }
 0x1ef   : > { %s1030_s18 = scalar_lea.vmem %s1549_s15, 512  ;;  %p1679_p3 = scmp.ne.s32.totalorder %s1666_s5, 0 }
 0x1f0   : > { %p1031_p6 = scmp.ne.s32.totalorder %s1549_s15, %s1030_s18  ;;  %s1187_s22 = smov [#allocation8]  }
 0x1f1   : > { %s1034_s7 = sshll.u32 %s1187_s22, 4  ;;  %s1035_s7 = int_to_ptr.vmem [resolvable:$false] %s1034_s7 }
 0x1f2   : > { %p1032_p5 = pnand %p1031_p6, %p1679_p3  ;;  %s1036_s21 = scalar_lea.vmem %s1035_s7, 1024 }
 0x1f3   : > { %s1546_s27 = scalar_lea.hbm %s1678_s3, %s781_s28  ;;  %p1037_p11 = scmp.lt.s32.totalorder %s1549_s15, %s1035_s7 }
 0x1f4   : > { %p1033_p12 = pneg %p1032_p5  ;;  %p1038_p0 = scmp.lt.s32.totalorder %s1036_s21, %s1030_s18 }
 0x1f6   : > { %p1039_p4 = por %p1038_p0, %p1037_p11 }
 0x1f8   : > { %p1040_p9 = pnand %p1039_p4, %p1033_p12 }
 0x1fa   : > { %1043 = shalt.err (!%p1040_p9)
}
 0x1fb   : > { %s1044_s0 = scalar_lea.hbm %s1546_s27, 512  ;;  %s1048_s10 = scalar_lea.hbm %s1678_s3, 1024 }
 0x1fc   : > { %p1045_p2 = scmp.ne.s32.totalorder %s1546_s27, %s1044_s0  ;;  %p1049_p8 = scmp.lt.u32.totalorder %s1546_s27, %s1678_s3 }
 0x1fd   : > { %p1050_p10 = scmp.lt.u32.totalorder %s1048_s10, %s1044_s0  ;;  %p1052_p6 = scmp.lt.u32.totalorder %s1044_s0, %s1546_s27 }
 0x1fe   : > { %p1046_p13 = pnand %p1045_p2, %p1679_p3 }
 0x1ff   : > { %p1051_p1 = por %p1050_p10, %p1049_p8 }
 0x200   : > { %p1047_p7 = pneg %p1046_p13 }
 0x201   : > { %p1053_p5 = por %p1052_p6, %p1051_p1 }
 0x203   : > { %p1054_p12 = pnand %p1053_p5, %p1047_p7 }
 0x205   : > { %1057 = shalt.err (!%p1054_p12)
}
 0x206   : > { %s1188_s28 = smov 256   ;;  %s1189_s26 = smov 512  }
 0x207   : > { %s1190_s6 = smov 16  }
 0x208   : > { %786 = dma.vmem_to_hbm [thread:$0]  (%p1679_p3), %s1549_s15, 512, %s1546_s27, %s1553_s9, %s1188_s28, %s1189_s26, %s1190_s6  }
 0x209 PF: > { %p800_p11 = scmp.ge.s32.totalorder %s1180_s25, 2  ;;  %s608_s18 = sand.u32 1, %s1128_s12  }
 0x20a   : > { %p1680_p0 = scmp.ne.s32.totalorder %s1668_s30, 0  ;;  %s609_s22 = scalar_lea.sflag [#allocation5], %s608_s18 }
 0x20c   : > { %p796_p4 = pnand %p800_p11, %p1680_p0 }
 0x20e   : > { %1123 = dma.done.wait (!%p796_p4), %s609_s22, 512  }
 0x20f   : > { %1125 = vsyncadd (!%p796_p4), %s609_s22, 4294966784  ;;  %s22_s25 = sadd.s32 1, %s1180_s25   ;;  %s1682_s5 = sld [smem:[#allocation17_spill]] }
 0x210   : > { %p1582_p9 = scmp.ge.s32.totalorder %s22_s25, 6   ;;  %s1683_s27 = sld [smem:[#allocation12_spill]] }
 0x211   : > { %s1684_s20 = sld [smem:[#allocation15_spill]]  ;;  %s1685_s30 = sld [smem:[#allocation14_spill]] }
 0x212   : > { %s1686_s9 = sld [smem:[#allocation16_spill]]  ;;  %s1687_s12 = smov %s1132_s13 }
 0x213   : > { %s1688_s13 = smov %s1136_s14  ;;  %s1689_s14 = smov %s1416_s29 }
 0x214   : > { %s1690_s15 = smov %s1144_s16  ;;  %s1691_s16 = smov %s1148_s17 }
 0x215   : > { %s1692_s17 = smov %s1682_s5  ;;  %s1693_s18 = smov %s1156_s19 }
 0x216   : > { %s1694_s19 = smov %s1683_s27  ;;  %s1695_s21 = smov %s1172_s23 }
 0x217   : > { %s1696_s22 = smov %s1176_s24  ;;  %s1697_s23 = smov %s1685_s30 }
 0x218   : > { %s1698_s24 = smov %s1686_s9  ;;  %21 = sbr.rel (!%p1582_p9) target bundleno = 15 (0xf), region = 101 }
 0x21f   :  { %614 = vsyncpa [#allocation4], 1 }
 0x220   :  { %616 = vsyncpa [#allocation4 + $0x1], 1 }
 0x221   :  { %617 = vsyncpa [#allocation7], 1 }
 0x222   :  { %619 = vsyncpa [#allocation7 + $0x1], 1 }
 0x223   :  { %620 = vsyncpa [#allocation5], 1 }
 0x224   :  { %622 = vsyncpa [#allocation5 + $0x1], 1 }

</bundles_post_ra>
